<compile_context>
chip_gen: v7x
topology: tpu7x:2x2x1
jax: 0.10.0
libtpu: 0.0.40
codegen_flags: <defaults>
</compile_context>

<pallas_src>
import functools

import jax
import jax.numpy as jnp
from jax.experimental import pallas as pl
from jax.experimental.pallas import tpu as pltpu


# ---------------------------------------------------------------------------
# Model hyper-parameters (from the PyTorch module; V chosen small since the
# original vocab comes from a pickle we do not load).
# ---------------------------------------------------------------------------
V = 50                     # synthetic vocab size (word2idx pickle not loaded)
EMBED_SIZE = 128
KS = (3, 4, 5)
NUM_FILTERS = 100
NUM_CLASSES = 3            # fc1 exists in __init__ but is unused in forward()

F_PAD = 128                          # NUM_FILTERS padded to the 128-lane width
TOT_COLS = sum(KS) * F_PAD           # 12 * 128 = 1536 concatenated tap columns
OUT_COLS = len(KS) * F_PAD           # 3 * 128 = 384 (lane-dense output)


# ---------------------------------------------------------------------------
# Kernel
# ---------------------------------------------------------------------------
def _fused_conv_kernel(b_tile, seq_len):
    """Conv1d(k=3,4,5) + global max-pool + bias + ReLU for one batch tile.

    One MXU matmul computes every tap of every kernel size at once; the conv
    outputs are then formed by shift-and-add along the sequence axis (VPU),
    max-pooled over the sequence, biased and ReLU'd.
    """

    def kernel(emb_ref, w_ref, b_ref, out_ref):
        # (b_tile, L, 128) -> (b_tile*L, 128) ; single lane-dense matmul.
        emb = emb_ref[...].reshape(b_tile * seq_len, EMBED_SIZE)
        z = jax.lax.dot_general(
            emb, w_ref[...],
            dimension_numbers=(((1,), (0,)), ((), ())),
            preferred_element_type=jnp.float32,
        ).reshape(b_tile, seq_len, TOT_COLS)              # (b, L, 1536)

        col = 0
        for ki, k in enumerate(KS):
            lout = seq_len - k + 1
            # conv[b, t, f] = sum_tau z[b, t+tau, col + tau*F_PAD + f]
            acc = z[:, 0:lout, col:col + F_PAD]
            for tau in range(1, k):                        # static unroll, VPU
                acc = acc + z[:, tau:tau + lout,
                              col + tau * F_PAD:col + (tau + 1) * F_PAD]
            col += k * F_PAD

            pooled = jnp.max(acc, axis=1)                  # global max over seq
            pooled = pooled + b_ref[ki:ki + 1, :]          # bias after max-pool
            out_ref[:, ki * F_PAD:(ki + 1) * F_PAD] = jnp.maximum(
                pooled, 0.0).astype(out_ref.dtype)

    return kernel


def _pick_batch_tile(batch, seq_len):
    """Whole batch when tiny; otherwise a sublane-aligned divisor of the batch
    sized so the (emb + Z) tile stays ~<=4 MiB (safe for v7x scoped VMEM with
    double-buffering) while staying big enough to pipeline well."""
    if batch <= 8:
        return batch
    bytes_per_row = 4 * seq_len * (EMBED_SIZE + TOT_COLS)     # f32 emb + Z
    tb = max(8, min(batch, (4 << 20) // max(bytes_per_row, 1)))
    tb = (tb // 8) * 8
    while tb > 8 and batch % tb:
        tb -= 8
    return tb if (tb >= 8 and batch % tb == 0) else batch


def _conv_call(batch, seq_len, b_tile):
    return pl.pallas_call(
        _fused_conv_kernel(b_tile, seq_len),
        out_shape=jax.ShapeDtypeStruct((batch, OUT_COLS), jnp.float32),
        grid=(batch // b_tile,),
        in_specs=[
            pl.BlockSpec((b_tile, seq_len, EMBED_SIZE), lambda i: (i, 0, 0)),
            pl.BlockSpec((EMBED_SIZE, TOT_COLS), lambda i: (0, 0)),
            pl.BlockSpec((len(KS), F_PAD), lambda i: (0, 0)),
        ],
        out_specs=pl.BlockSpec((b_tile, OUT_COLS), lambda i: (i, 0)),
        compiler_params=pltpu.CompilerParams(
            dimension_semantics=("parallel",)),
    )


# ---------------------------------------------------------------------------
# Parameters
# ---------------------------------------------------------------------------
def init_params(key):
    """Deterministic synthetic parameters matching the module's shapes."""
    keys = jax.random.split(key, 2 + 2 * len(KS))
    params = {
        # nn.Embedding(V + 2, embed_size)
        "embedding": jax.random.normal(keys[0], (V + 2, EMBED_SIZE),
                                       jnp.float32) * 0.1,
    }
    for i, k in enumerate(KS):
        # nn.Conv1d(embed_size, num_filters, k): weight (F, E, k), bias (F,)
        params[f"conv{k}_w"] = jax.random.normal(
            keys[2 + 2 * i], (NUM_FILTERS, EMBED_SIZE, k), jnp.float32) * 0.05
        params[f"conv{k}_b"] = jax.random.normal(
            keys[3 + 2 * i], (NUM_FILTERS,), jnp.float32) * 0.05
    # fc1 params exist in __init__ but are not used by forward(); kept for parity.
    params["fc1_w"] = jax.random.normal(
        keys[1], (NUM_CLASSES, len(KS) * NUM_FILTERS), jnp.float32) * 0.05
    params["fc1_b"] = jnp.zeros((NUM_CLASSES,), jnp.float32)
    return params


def pack_conv_params(params):
    """One-time repack: PyTorch Conv1d weights (F, E, k) -> a single lane-dense
    (E, sum_k k*128) matrix; biases padded to 128 and stacked (done at init,
    not per forward call)."""
    w_blocks, b_rows = [], []
    for k in KS:
        w = jnp.transpose(params[f"conv{k}_w"], (2, 1, 0))          # (k, E, F)
        w = jnp.pad(w, ((0, 0), (0, 0), (0, F_PAD - NUM_FILTERS)))  # (k, E, 128)
        # columns [tau*128:(tau+1)*128] hold the tau-th tap's (E, 128) weight
        w_blocks.append(
            jnp.transpose(w, (1, 0, 2)).reshape(EMBED_SIZE, k * F_PAD))
        b_rows.append(jnp.pad(params[f"conv{k}_b"],
                              (0, F_PAD - NUM_FILTERS)))
    return {
        "embedding": params["embedding"],
        "w_cat": jnp.concatenate(w_blocks, axis=1),                 # (128, 1536)
        "b_cat": jnp.stack(b_rows, axis=0),                         # (3, 128)
    }


# ---------------------------------------------------------------------------
# Forward pass (jitted)
# ---------------------------------------------------------------------------
@jax.jit
def cnn_forward(inputs, packed):
    """Mirrors CNN.forward: returns a list of three (B, num_filters) arrays."""
    batch, seq_len = inputs.shape
    # Embedding lookup stays as one fused XLA gather under jit.
    # TODO(synk): at production scale this gather could be folded into the
    # kernel with the 26 KiB table resident in VMEM; kept outside for
    # guaranteed-clean lowering.
    emb = jnp.take(packed["embedding"], inputs, axis=0)    # (B, L, E) f32

    b_tile = _pick_batch_tile(batch, seq_len)
    out = _conv_call(batch, seq_len, b_tile)(emb, packed["w_cat"],
                                             packed["b_cat"])   # (B, 384)
    # Slice the padded, per-k contiguous 128-wide blocks back to 100 filters.
    return [out[:, ki * F_PAD:ki * F_PAD + NUM_FILTERS]
            for ki in range(len(KS))]
    # TODO(synk): dropout / fc1 are declared in __init__ but never used in
    # forward(), so they are intentionally not applied here.


# ---------------------------------------------------------------------------
# Pure-JAX reference (for in-script correctness check)
# ---------------------------------------------------------------------------
def _reference_forward(inputs, params):
    emb = jnp.take(params["embedding"], inputs, axis=0)            # (B, L, E)
    seq_len = inputs.shape[1]
    outs = []
    for k in KS:
        w = params[f"conv{k}_w"]                                    # (F, E, k)
        b = params[f"conv{k}_b"]
        lout = seq_len - k + 1
        conv = sum(
            jnp.einsum("ble,fe->blf", emb[:, tau:tau + lout, :], w[:, :, tau])
            for tau in range(k))                                    # (B, Lout, F)
        outs.append(jnp.maximum(jnp.max(conv + b[None, None, :], axis=1), 0.0))
    return outs


if __name__ == "__main__":
    key = jax.random.PRNGKey(0)
    pkey, dkey = jax.random.split(key)

    params = init_params(pkey)
    packed = pack_conv_params(params)

    # Small deterministic token-id input: batch=2, seq=16.
    B, L = 2, 16
    inputs = jax.random.randint(dkey, (B, L), minval=0, maxval=V + 2,
                                dtype=jnp.int32)

    outs = cnn_forward(inputs, packed)
    outs = [jax.block_until_ready(o) for o in outs]
    refs = _reference_forward(inputs, params)

    assert len(outs) == len(KS)
    for o, r in zip(outs, refs):
        assert o.shape == (B, NUM_FILTERS)
        assert o.dtype == jnp.float32
        assert bool(jnp.all(o >= 0.0))                 # ReLU output non-negative
        assert bool(jnp.allclose(o, r, atol=1e-4, rtol=1e-4))

    print("KERNEL_OK")
</pallas_src>

<mosaic_0001>
module attributes {stable_mosaic.version = 11 : i64} {
  func.func @kernel(%arg0: i32, %arg1: memref<2x16x128xf32, #tpu.memory_space<vmem>>, %arg2: memref<128x1536xf32, #tpu.memory_space<vmem>>, %arg3: memref<3x128xf32, #tpu.memory_space<vmem>>, %arg4: memref<2x384xf32, #tpu.memory_space<vmem>>) attributes {dimension_semantics = [#tpu.dimension_semantics<parallel>], iteration_bounds = array<i64: 1>, scalar_prefetch = 0 : i64, scratch_operands = 0 : i64, tpu.core_type = #tpu.core_type<tc>, window_params = [{transform_indices = @transform_0, window_bounds = array<i64: 2, 16, 128>}, {pipeline_mode = #tpu.pipeline_mode<synchronous>, transform_indices = @transform_1, window_bounds = array<i64: 128, 1536>}, {pipeline_mode = #tpu.pipeline_mode<synchronous>, transform_indices = @transform_2, window_bounds = array<i64: 3, 128>}, {transform_indices = @transform_3, window_bounds = array<i64: 2, 384>}]} {
    %c0 = arith.constant 0 : index
    %c0_0 = arith.constant 0 : index
    %c0_1 = arith.constant 0 : index
    %0 = vector.load %arg1[%c0, %c0_0, %c0_1] : memref<2x16x128xf32, #tpu.memory_space<vmem>>, vector<2x16x128xf32>
    %1 = vector.shape_cast %0 : vector<2x16x128xf32> to vector<32x128xf32>
    %c0_2 = arith.constant 0 : index
    %c0_3 = arith.constant 0 : index
    %2 = vector.load %arg2[%c0_2, %c0_3] : memref<128x1536xf32, #tpu.memory_space<vmem>>, vector<128x1536xf32>
    %cst = arith.constant dense<0.000000e+00> : vector<32x1536xf32>
    %3 = tpu.matmul %1, %2, %cst {dimension_numbers = #tpu.dot_dimension_numbers<[1], [0], [0], [1], [0, 0, 1, 1], [], []>} : vector<32x128xf32>, vector<128x1536xf32>, vector<32x1536xf32> -> vector<32x1536xf32>
    %4 = vector.shape_cast %3 : vector<32x1536xf32> to vector<2x16x1536xf32>
    %5 = vector.extract_strided_slice %4 {offsets = [0, 0, 0], sizes = [2, 14, 128], strides = [1, 1, 1]} : vector<2x16x1536xf32> to vector<2x14x128xf32>
    %6 = vector.extract_strided_slice %4 {offsets = [0, 1, 128], sizes = [2, 14, 128], strides = [1, 1, 1]} : vector<2x16x1536xf32> to vector<2x14x128xf32>
    %7 = arith.addf %5, %6 : vector<2x14x128xf32>
    %8 = vector.extract_strided_slice %4 {offsets = [0, 2, 256], sizes = [2, 14, 128], strides = [1, 1, 1]} : vector<2x16x1536xf32> to vector<2x14x128xf32>
    %9 = arith.addf %7, %8 : vector<2x14x128xf32>
    %cst_4 = arith.constant dense<0xFF800000> : vector<2x128xf32>
    %10 = vector.multi_reduction <maximumf>, %9, %cst_4 [1] : vector<2x14x128xf32> to vector<2x128xf32>
    %c0_5 = arith.constant 0 : index
    %c0_6 = arith.constant 0 : index
    %11 = vector.load %arg3[%c0_5, %c0_6] : memref<3x128xf32, #tpu.memory_space<vmem>>, vector<1x128xf32>
    %12 = vector.broadcast %11 : vector<1x128xf32> to vector<2x128xf32>
    %13 = arith.addf %10, %12 : vector<2x128xf32>
    %cst_7 = arith.constant 0.000000e+00 : f32
    %14 = vector.broadcast %cst_7 : f32 to vector<2x128xf32>
    %15 = arith.maximumf %13, %14 : vector<2x128xf32>
    %c0_8 = arith.constant 0 : index
    %c0_9 = arith.constant 0 : index
    %16 = vector.load %arg4[%c0_8, %c0_9] : memref<2x384xf32, #tpu.memory_space<vmem>>, vector<2x128xf32>
    tpu.vector_store %arg4[%c0_8, %c0_9], %15 {strides = array<i32>} : memref<2x384xf32, #tpu.memory_space<vmem>>, vector<2x128xf32>,
    %17 = vector.extract_strided_slice %4 {offsets = [0, 0, 384], sizes = [2, 13, 128], strides = [1, 1, 1]} : vector<2x16x1536xf32> to vector<2x13x128xf32>
    %18 = vector.extract_strided_slice %4 {offsets = [0, 1, 512], sizes = [2, 13, 128], strides = [1, 1, 1]} : vector<2x16x1536xf32> to vector<2x13x128xf32>
    %19 = arith.addf %17, %18 : vector<2x13x128xf32>
    %20 = vector.extract_strided_slice %4 {offsets = [0, 2, 640], sizes = [2, 13, 128], strides = [1, 1, 1]} : vector<2x16x1536xf32> to vector<2x13x128xf32>
    %21 = arith.addf %19, %20 : vector<2x13x128xf32>
    %22 = vector.extract_strided_slice %4 {offsets = [0, 3, 768], sizes = [2, 13, 128], strides = [1, 1, 1]} : vector<2x16x1536xf32> to vector<2x13x128xf32>
    %23 = arith.addf %21, %22 : vector<2x13x128xf32>
    %cst_10 = arith.constant dense<0xFF800000> : vector<2x128xf32>
    %24 = vector.multi_reduction <maximumf>, %23, %cst_10 [1] : vector<2x13x128xf32> to vector<2x128xf32>
    %c1 = arith.constant 1 : index
    %c0_11 = arith.constant 0 : index
    %25 = vector.load %arg3[%c1, %c0_11] : memref<3x128xf32, #tpu.memory_space<vmem>>, vector<1x128xf32>
    %26 = vector.broadcast %25 : vector<1x128xf32> to vector<2x128xf32>
    %27 = arith.addf %24, %26 : vector<2x128xf32>
    %cst_12 = arith.constant 0.000000e+00 : f32
    %28 = vector.broadcast %cst_12 : f32 to vector<2x128xf32>
    %29 = arith.maximumf %27, %28 : vector<2x128xf32>
    %c0_13 = arith.constant 0 : index
    %c128 = arith.constant 128 : index
    %30 = vector.load %arg4[%c0_13, %c128] : memref<2x384xf32, #tpu.memory_space<vmem>>, vector<2x128xf32>
    tpu.vector_store %arg4[%c0_13, %c128], %29 {strides = array<i32>} : memref<2x384xf32, #tpu.memory_space<vmem>>, vector<2x128xf32>,
    %31 = vector.extract_strided_slice %4 {offsets = [0, 0, 896], sizes = [2, 12, 128], strides = [1, 1, 1]} : vector<2x16x1536xf32> to vector<2x12x128xf32>
    %32 = vector.extract_strided_slice %4 {offsets = [0, 1, 1024], sizes = [2, 12, 128], strides = [1, 1, 1]} : vector<2x16x1536xf32> to vector<2x12x128xf32>
    %33 = arith.addf %31, %32 : vector<2x12x128xf32>
    %34 = vector.extract_strided_slice %4 {offsets = [0, 2, 1152], sizes = [2, 12, 128], strides = [1, 1, 1]} : vector<2x16x1536xf32> to vector<2x12x128xf32>
    %35 = arith.addf %33, %34 : vector<2x12x128xf32>
    %36 = vector.extract_strided_slice %4 {offsets = [0, 3, 1280], sizes = [2, 12, 128], strides = [1, 1, 1]} : vector<2x16x1536xf32> to vector<2x12x128xf32>
    %37 = arith.addf %35, %36 : vector<2x12x128xf32>
    %38 = vector.extract_strided_slice %4 {offsets = [0, 4, 1408], sizes = [2, 12, 128], strides = [1, 1, 1]} : vector<2x16x1536xf32> to vector<2x12x128xf32>
    %39 = arith.addf %37, %38 : vector<2x12x128xf32>
    %cst_14 = arith.constant dense<0xFF800000> : vector<2x128xf32>
    %40 = vector.multi_reduction <maximumf>, %39, %cst_14 [1] : vector<2x12x128xf32> to vector<2x128xf32>
    %c2 = arith.constant 2 : index
    %c0_15 = arith.constant 0 : index
    %41 = vector.load %arg3[%c2, %c0_15] : memref<3x128xf32, #tpu.memory_space<vmem>>, vector<1x128xf32>
    %42 = vector.broadcast %41 : vector<1x128xf32> to vector<2x128xf32>
    %43 = arith.addf %40, %42 : vector<2x128xf32>
    %cst_16 = arith.constant 0.000000e+00 : f32
    %44 = vector.broadcast %cst_16 : f32 to vector<2x128xf32>
    %45 = arith.maximumf %43, %44 : vector<2x128xf32>
    %c0_17 = arith.constant 0 : index
    %c256 = arith.constant 256 : index
    %46 = vector.load %arg4[%c0_17, %c256] : memref<2x384xf32, #tpu.memory_space<vmem>>, vector<2x128xf32>
    tpu.vector_store %arg4[%c0_17, %c256], %45 {strides = array<i32>} : memref<2x384xf32, #tpu.memory_space<vmem>>, vector<2x128xf32>,
    return
  }
  func.func @transform_0(%arg0: i32) -> (i32, i32, i32) {
    %c0_i32 = arith.constant 0 : i32
    %c0_i32_0 = arith.constant 0 : i32
    %c0_i32_1 = arith.constant 0 : i32
    return %arg0, %c0_i32, %c0_i32_0 : i32, i32, i32
  }
  func.func @transform_1(%arg0: i32) -> (i32, i32) {
    %c0_i32 = arith.constant 0 : i32
    %c0_i32_0 = arith.constant 0 : i32
    %c0_i32_1 = arith.constant 0 : i32
    return %c0_i32, %c0_i32_0 : i32, i32
  }
  func.func @transform_2(%arg0: i32) -> (i32, i32) {
    %c0_i32 = arith.constant 0 : i32
    %c0_i32_0 = arith.constant 0 : i32
    %c0_i32_1 = arith.constant 0 : i32
    return %c0_i32, %c0_i32_0 : i32, i32
  }
  func.func @transform_3(%arg0: i32) -> (i32, i32) {
    %c0_i32 = arith.constant 0 : i32
    %c0_i32_0 = arith.constant 0 : i32
    return %arg0, %c0_i32 : i32, i32
  }
}

</mosaic_0001>

<bundles_post_ra>
// kernel: cnn_forward.1
= control target key start
LH: loop header
LB: loop body
LE: loop exit
PB: predicated region body
PF: predicated region fallthrough
CT: control target
= control target key end

     0   :  { %8 = vsyncpa [#allocation3], 0  ;;  %s1309_s12 = smov [#allocation2]   ;;  %s1500_s0 = inlined_call_operand.vmem [shape: f32[2,16,128], index: 0, kind: input, shape index: {}]   ;;  %s1501_s1 = inlined_call_operand.hbm [shape: f32[128,1536], index: 1, kind: input, shape index: {}]   ;;  %s1502_s2 = inlined_call_operand.vmem [shape: f32[3,128], index: 2, kind: input, shape index: {}]   ;;  %s1503_s3 = inlined_call_operand.vmem [shape: f32[2,384], index: 3, kind: output, shape index: {}]  }
   0x1   :  { %s16_s13 = sshll.u32 %s1309_s12, 4  ;;  %s1285_s16 = scalar_lea.hbm %s1501_s1, 24576  ;;  %s17_s13 = int_to_ptr.vmem [resolvable:$true] %s16_s13 }
   0x2   :  { %p1286_p0 = scmp.ne.s32.totalorder %s1501_s1, %s1285_s16  ;;  %p1289_p1 = scmp.lt.u32.totalorder %s1285_s16, %s1501_s1 }
   0x4   :  { %p1291_p2 = pnand %p1289_p1, %p1286_p0 }
   0x6   :  { %1294 = shalt.err (!%p1291_p2)
}
   0x7   :  { %s1295_s21 = scalar_lea.vmem %s17_s13, 24576  ;;  %p1300_p4 = scmp.lt.s32.totalorder %s17_s13, %s17_s13 }
   0x8   :  { %p1296_p3 = scmp.ne.s32.totalorder %s17_s13, %s1295_s21  ;;  %p1301_p5 = scmp.lt.s32.totalorder %s1295_s21, %s1295_s21 }
   0xa   :  { %p1302_p6 = por %p1301_p5, %p1300_p4 }
   0xc   :  { %p1303_p7 = pnand %p1302_p6, %p1296_p3 }
   0xe   :  { %1306 = shalt.err (!%p1303_p7)
}
   0xf   :  { %s1310_s22 = smov 1536   ;;  %s1311_s23 = smov 96  }
  0x10   :  { %22 = dma.hbm_to_vmem [thread:$0]  %s1501_s1, 24576, %s17_s13, [#allocation3], %s1310_s22, %s1310_s22, %s1311_s23  }
  0x11   :  { %1307 = dma.done.wait [#allocation3], 24576  }
  0x12   :  { %1308 = vsyncadd [#allocation3], 4294942720  ;;  %v1312_v0 = vmov 0.0   ;;  %v33_v1 = vld [vmem:[#allocation2 + $0x8] sm:$0xff]  ;;  %v35_v3 = vld [vmem:[#allocation2 + $0x18] sm:$0xff]  ;;  %vm762_vm0 = vcmask 1046528  }
  0x13   :  { %288 = vmatprep.mubr.f32.mxu0 %v1312_v0  ;;  %377 = vmatprep.mubr.f32.mxu1 %v1312_v0  ;;  %v45_v2 = vld [vmem:[#allocation2 + $0x68] sm:$0xff]  ;;  %v47_v5 = vld [vmem:[#allocation2 + $0x78] sm:$0xff]  ;;  %v32_v6 = vld [vmem:[#allocation2] sm:$0xff]  ;;  %vm781_vm1 = vcmask 1045504   ;;  %vm892_vm2 = vcmask 1044480   ;;  %vm842_vm3 = vcmask 1041409  }
  0x14   :  { %v1088_v4 = vpack.c.bf16 %v45_v2, %v33_v1  ;;  %v44_v7 = vld [vmem:[#allocation2 + $0x60] sm:$0xff]  ;;  %v1120_v8 = vpack.c.bf16 %v47_v5, %v35_v3  ;;  %v34_v10 = vld [vmem:[#allocation2 + $0x10] sm:$0xff]  ;;  %v57_v12 = vld [vmem:[#allocation2 + $0xc8] sm:$0xff]  ;;  %vm844_vm4 = vcmask 1043459   ;;  %vm846_vm5 = vcmask 1045509  }
  0x15   :  { %v1090_v9 = vpack.c.bf16 %v44_v7, %v32_v6  ;;  %v46_v11 = vld [vmem:[#allocation2 + $0x70] sm:$0xff]  ;;  %v69_v14 = vld [vmem:[#allocation2 + $0x128] sm:$0xff]  ;;  %v59_v15 = vld [vmem:[#allocation2 + $0xd8] sm:$0xff]  ;;  %vm848_vm6 = vcmask 1047559   ;;  %vm1015_vm7 = vcmask 1043456  }
  0x16   :  { %1089 = vmatprep.subr.bf16.mxu0 %v1088_v4  ;;  %v1122_v13 = vpack.c.bf16 %v46_v11, %v34_v10  ;;  %v71_v16 = vld [vmem:[#allocation2 + $0x138] sm:$0xff]  ;;  %1121 = vmatprep.subr.bf16.mxu1 %v1120_v8  ;;  %v1092_v17 = vpack.c.bf16 %v69_v14, %v57_v12  ;;  %v56_v19 = vld [vmem:[#allocation2 + $0xc0] sm:$0xff]  ;;  %v58_v21 = vld [vmem:[#allocation2 + $0xd0] sm:$0xff] }
  0x17   :  { %1091 = vmatpush1.bf16.msra.mxu0 %v1090_v9  ;;  %v1124_v18 = vpack.c.bf16 %v71_v16, %v59_v15  ;;  %v68_v20 = vld [vmem:[#allocation2 + $0x120] sm:$0xff]  ;;  %v70_v23 = vld [vmem:[#allocation2 + $0x130] sm:$0xff]  ;;  %v81_v24 = vld [vmem:[#allocation2 + $0x188] sm:$0xff] }
  0x18   :  { %1123 = vmatpush1.bf16.msra.mxu1 %v1122_v13  ;;  %v1094_v22 = vpack.c.bf16 %v68_v20, %v56_v19  ;;  %v93_v25 = vld [vmem:[#allocation2 + $0x1e8] sm:$0xff]  ;;  %1093 = vmatprep.subr.bf16.mxu0 %v1092_v17  ;;  %v1126_v26 = vpack.c.bf16 %v70_v23, %v58_v21  ;;  %v83_v28 = vld [vmem:[#allocation2 + $0x198] sm:$0xff]  ;;  %v80_v30 = vld [vmem:[#allocation2 + $0x180] sm:$0xff] }
  0x19   :  { %1125 = vmatprep.subr.bf16.mxu1 %v1124_v18  ;;  %v1096_v27 = vpack.c.bf16 %v93_v25, %v81_v24  ;;  %v95_v29 = vld [vmem:[#allocation2 + $0x1f8] sm:$0xff]  ;;  %v92_v32 = vld [vmem:[#allocation2 + $0x1e0] sm:$0xff]  ;;  %v82_v33 = vld [vmem:[#allocation2 + $0x190] sm:$0xff] }
  0x1a   :  { %v1128_v31 = vpack.c.bf16 %v95_v29, %v83_v28  ;;  %v94_v34 = vld [vmem:[#allocation2 + $0x1f0] sm:$0xff]  ;;  %v1098_v35 = vpack.c.bf16 %v92_v32, %v80_v30  ;;  %v105_v36 = vld [vmem:[#allocation2 + $0x248] sm:$0xff]  ;;  %v107_v38 = vld [vmem:[#allocation2 + $0x258] sm:$0xff] }
  0x1b   :  { %1095 = vmatpush1.bf16.msra.mxu0 %v1094_v22  ;;  %v117_v37 = vld [vmem:[#allocation2 + $0x2a8] sm:$0xff]  ;;  %v1130_v39 = vpack.c.bf16 %v94_v34, %v82_v33  ;;  %v119_v41 = vld [vmem:[#allocation2 + $0x2b8] sm:$0xff]  ;;  %v104_v42 = vld [vmem:[#allocation2 + $0x240] sm:$0xff] }
  0x1c   :  { %1127 = vmatpush1.bf16.msra.mxu1 %v1126_v26  ;;  %1097 = vmatprep.subr.bf16.mxu0 %v1096_v27  ;;  %v1100_v40 = vpack.c.bf16 %v117_v37, %v105_v36  ;;  %v116_v43 = vld [vmem:[#allocation2 + $0x2a0] sm:$0xff]  ;;  %v1132_v44 = vpack.c.bf16 %v119_v41, %v107_v38  ;;  %v106_v45 = vld [vmem:[#allocation2 + $0x250] sm:$0xff]  ;;  %v129_v47 = vld [vmem:[#allocation2 + $0x308] sm:$0xff] }
  0x1d   :  { %1129 = vmatprep.subr.bf16.mxu1 %v1128_v31  ;;  %v118_v46 = vld [vmem:[#allocation2 + $0x2b0] sm:$0xff]  ;;  %v141_v48 = vld [vmem:[#allocation2 + $0x368] sm:$0xff]  ;;  %v131_v49 = vld [vmem:[#allocation2 + $0x318] sm:$0xff]  ;;  %v1102_v51 = vpack.c.bf16 %v116_v43, %v104_v42 }
  0x1e   :  { %v143_v50 = vld [vmem:[#allocation2 + $0x378] sm:$0xff]  ;;  %v1134_v52 = vpack.c.bf16 %v118_v46, %v106_v45  ;;  %v1104_v53 = vpack.c.bf16 %v141_v48, %v129_v47  ;;  %v128_v54 = vld [vmem:[#allocation2 + $0x300] sm:$0xff]  ;;  %v130_v56 = vld [vmem:[#allocation2 + $0x310] sm:$0xff] }
  0x1f   :  { %1099 = vmatpush1.bf16.msra.mxu0 %v1098_v35  ;;  %v140_v55 = vld [vmem:[#allocation2 + $0x360] sm:$0xff]  ;;  %v1136_v57 = vpack.c.bf16 %v143_v50, %v131_v49  ;;  %v142_v58 = vld [vmem:[#allocation2 + $0x370] sm:$0xff]  ;;  %v153_v59 = vld [vmem:[#allocation2 + $0x3c8] sm:$0xff] }
  0x20   :  { %1131 = vmatpush1.bf16.msra.mxu1 %v1130_v39  ;;  %1101 = vmatprep.subr.bf16.mxu0 %v1100_v40  ;;  %v165_v60 = vld [vmem:[#allocation2 + $0x428] sm:$0xff]  ;;  %v155_v61 = vld [vmem:[#allocation2 + $0x3d8] sm:$0xff]  ;;  %v1106_v63 = vpack.c.bf16 %v140_v55, %v128_v54  ;;  %v1138_v1 = vpack.c.bf16 %v142_v58, %v130_v56  ;;  %v152_v3 = vld [vmem:[#allocation2 + $0x3c0] sm:$0xff] }
  0x21   :  { %1133 = vmatprep.subr.bf16.mxu1 %v1132_v44  ;;  %v167_v62 = vld [vmem:[#allocation2 + $0x438] sm:$0xff]  ;;  %v1108_v2 = vpack.c.bf16 %v165_v60, %v153_v59  ;;  %v164_v4 = vld [vmem:[#allocation2 + $0x420] sm:$0xff]  ;;  %v154_v5 = vld [vmem:[#allocation2 + $0x3d0] sm:$0xff] }
  0x22   :  { %v1140_v6 = vpack.c.bf16 %v167_v62, %v155_v61  ;;  %v166_v7 = vld [vmem:[#allocation2 + $0x430] sm:$0xff]  ;;  %v177_v8 = vld [vmem:[#allocation2 + $0x488] sm:$0xff]  ;;  %v179_v10 = vld [vmem:[#allocation2 + $0x498] sm:$0xff]  ;;  %v1110_v12 = vpack.c.bf16 %v164_v4, %v152_v3 }
  0x23   :  { %1103 = vmatpush1.bf16.msra.mxu0 %v1102_v51  ;;  %v189_v9 = vld [vmem:[#allocation2 + $0x4e8] sm:$0xff]  ;;  %v191_v11 = vld [vmem:[#allocation2 + $0x4f8] sm:$0xff]  ;;  %v1142_v13 = vpack.c.bf16 %v166_v7, %v154_v5  ;;  %v176_v15 = vld [vmem:[#allocation2 + $0x480] sm:$0xff] }
  0x24   :  { %1135 = vmatpush1.bf16.msra.mxu1 %v1134_v52  ;;  %1105 = vmatprep.subr.bf16.mxu0 %v1104_v53  ;;  %v1112_v14 = vpack.c.bf16 %v189_v9, %v177_v8  ;;  %v188_v16 = vld [vmem:[#allocation2 + $0x4e0] sm:$0xff]  ;;  %v178_v17 = vld [vmem:[#allocation2 + $0x490] sm:$0xff]  ;;  %v1144_v18 = vpack.c.bf16 %v191_v11, %v179_v10  ;;  %v201_v20 = vld [vmem:[#allocation2 + $0x548] sm:$0xff] }
  0x25   :  { %1137 = vmatprep.subr.bf16.mxu1 %v1136_v57  ;;  %v190_v19 = vld [vmem:[#allocation2 + $0x4f0] sm:$0xff]  ;;  %v213_v21 = vld [vmem:[#allocation2 + $0x5a8] sm:$0xff]  ;;  %v203_v22 = vld [vmem:[#allocation2 + $0x558] sm:$0xff]  ;;  %v1114_v24 = vpack.c.bf16 %v188_v16, %v176_v15 }
  0x26   :  { %v215_v23 = vld [vmem:[#allocation2 + $0x5b8] sm:$0xff]  ;;  %v1146_v25 = vpack.c.bf16 %v190_v19, %v178_v17  ;;  %v1116_v26 = vpack.c.bf16 %v213_v21, %v201_v20  ;;  %v200_v27 = vld [vmem:[#allocation2 + $0x540] sm:$0xff]  ;;  %v202_v29 = vld [vmem:[#allocation2 + $0x550] sm:$0xff] }
  0x27   :  { %1107 = vmatpush1.bf16.msra.mxu0 %v1106_v63  ;;  %v212_v28 = vld [vmem:[#allocation2 + $0x5a0] sm:$0xff]  ;;  %v1148_v30 = vpack.c.bf16 %v215_v23, %v203_v22  ;;  %v214_v31 = vld [vmem:[#allocation2 + $0x5b0] sm:$0xff]  ;;  %v37_v32 = vld [vmem:[#allocation2 + $0x28] sm:$0xff] }
  0x28   :  { %1139 = vmatpush1.bf16.msra.mxu1 %v1138_v1  ;;  %1109 = vmatprep.subr.bf16.mxu0 %v1108_v2  ;;  %v49_v33 = vld [vmem:[#allocation2 + $0x88] sm:$0xff]  ;;  %v39_v34 = vld [vmem:[#allocation2 + $0x38] sm:$0xff]  ;;  %v1118_v36 = vpack.c.bf16 %v212_v28, %v200_v27  ;;  %v1150_v37 = vpack.c.bf16 %v214_v31, %v202_v29  ;;  %v36_v39 = vld [vmem:[#allocation2 + $0x20] sm:$0xff] }
  0x29   :  { %1141 = vmatprep.subr.bf16.mxu1 %v1140_v6  ;;  %v51_v35 = vld [vmem:[#allocation2 + $0x98] sm:$0xff]  ;;  %v1152_v38 = vpack.c.bf16 %v49_v33, %v37_v32  ;;  %v48_v40 = vld [vmem:[#allocation2 + $0x80] sm:$0xff]  ;;  %v38_v42 = vld [vmem:[#allocation2 + $0x30] sm:$0xff] }
  0x2a   :  { %v1184_v41 = vpack.c.bf16 %v51_v35, %v39_v34  ;;  %v50_v43 = vld [vmem:[#allocation2 + $0x90] sm:$0xff]  ;;  %v61_v44 = vld [vmem:[#allocation2 + $0xe8] sm:$0xff]  ;;  %v1351_v46 = vld [vmem:[%s1500_s0] sm:$0xff]  ;;  %v1154_v47 = vpack.c.bf16 %v48_v40, %v36_v39 }
  0x2b   :  { %1111 = vmatpush1.bf16.msra.mxu0 %v1110_v12  ;;  %v73_v45 = vld [vmem:[#allocation2 + $0x148] sm:$0xff]  ;;  %v63_v48 = vld [vmem:[#allocation2 + $0xf8] sm:$0xff]  ;;  %v1186_v50 = vpack.c.bf16 %v50_v43, %v38_v42  ;;  %v60_v51 = vld [vmem:[#allocation2 + $0xe0] sm:$0xff] }
  0x2c   :  { %1143 = vmatpush1.bf16.msra.mxu1 %v1142_v13  ;;  %1113 = vmatprep.subr.bf16.mxu0 %v1112_v14  ;;  %v75_v49 = vld [vmem:[#allocation2 + $0x158] sm:$0xff]  ;;  %v72_v52 = vld [vmem:[#allocation2 + $0x140] sm:$0xff]  ;;  %v1156_v53 = vpack.c.bf16 %v73_v45, %v61_v44  ;;  %v62_v54 = vld [vmem:[#allocation2 + $0xf0] sm:$0xff] }
  0x2d   :  { %1145 = vmatprep.subr.bf16.mxu1 %v1144_v18  ;;  %v74_v55 = vld [vmem:[#allocation2 + $0x150] sm:$0xff]  ;;  %v85_v56 = vld [vmem:[#allocation2 + $0x1a8] sm:$0xff]  ;;  %v1188_v57 = vpack.c.bf16 %v75_v49, %v63_v48  ;;  %v87_v59 = vld [vmem:[#allocation2 + $0x1b8] sm:$0xff]  ;;  %v1158_v62 = vpack.c.bf16 %v72_v52, %v60_v51 }
  0x2e   :  { %v97_v58 = vld [vmem:[#allocation2 + $0x208] sm:$0xff]  ;;  %v99_v60 = vld [vmem:[#allocation2 + $0x218] sm:$0xff]  ;;  %v1190_v63 = vpack.c.bf16 %v74_v55, %v62_v54  ;;  %v84_v1 = vld [vmem:[#allocation2 + $0x1a0] sm:$0xff] }
  0x2f   :  { %1115 = vmatpush1.bf16.msra.mxu0 %v1114_v24  ;;  %v1358_v61 = vld [vmem:[%s1500_s0 + $0x8] sm:$0xff]  ;;  %v96_v2 = vld [vmem:[#allocation2 + $0x200] sm:$0xff]  ;;  %v86_v3 = vld [vmem:[#allocation2 + $0x1b0] sm:$0xff]  ;;  %v1160_v4 = vpack.c.bf16 %v97_v58, %v85_v56  ;;  %v1192_v5 = vpack.c.bf16 %v99_v60, %v87_v59 }
  0x30   :  { %1147 = vmatpush1.bf16.msra.mxu1 %v1146_v25  ;;  %1117 = vmatprep.subr.bf16.mxu0 %v1116_v26  ;;  %v98_v6 = vld [vmem:[#allocation2 + $0x210] sm:$0xff]  ;;  %v109_v7 = vld [vmem:[#allocation2 + $0x268] sm:$0xff]  ;;  %v111_v9 = vld [vmem:[#allocation2 + $0x278] sm:$0xff]  ;;  %v1162_v12 = vpack.c.bf16 %v96_v2, %v84_v1 }
  0x31   :  { %1149 = vmatprep.subr.bf16.mxu1 %v1148_v30  ;;  %v121_v8 = vld [vmem:[#allocation2 + $0x2c8] sm:$0xff]  ;;  %v123_v10 = vld [vmem:[#allocation2 + $0x2d8] sm:$0xff]  ;;  %v1367_v11 = vld [vmem:[%s1500_s0 + $0x10] sm:$0xff]  ;;  %v1194_v13 = vpack.c.bf16 %v98_v6, %v86_v3 }
  0x32   :  { %v1164_v14 = vpack.c.bf16 %v121_v8, %v109_v7  ;;  %v108_v15 = vld [vmem:[#allocation2 + $0x260] sm:$0xff]  ;;  %v110_v17 = vld [vmem:[#allocation2 + $0x270] sm:$0xff]  ;;  %v1196_v18 = vpack.c.bf16 %v123_v10, %v111_v9  ;;  %v133_v20 = vld [vmem:[#allocation2 + $0x328] sm:$0xff] }
  0x33   :  { %1119 = vmatpush1.bf16.msra.mxu0 %v1118_v36  ;;  %v120_v16 = vld [vmem:[#allocation2 + $0x2c0] sm:$0xff]  ;;  %v122_v19 = vld [vmem:[#allocation2 + $0x2d0] sm:$0xff]  ;;  %v145_v21 = vld [vmem:[#allocation2 + $0x388] sm:$0xff] }
  0x34   :  { %1151 = vmatpush1.bf16.msra.mxu1 %v1150_v37  ;;  %1153 = vmatprep.subr.bf16.mxu0 %v1152_v38  ;;  %v135_v22 = vld [vmem:[#allocation2 + $0x338] sm:$0xff]  ;;  %v1166_v25 = vpack.c.bf16 %v120_v16, %v108_v15  ;;  %v1198_v26 = vpack.c.bf16 %v122_v19, %v110_v17  ;;  %v1168_v27 = vpack.c.bf16 %v145_v21, %v133_v20  ;;  %v132_v28 = vld [vmem:[#allocation2 + $0x320] sm:$0xff]  ;;  %v134_v30 = vld [vmem:[#allocation2 + $0x330] sm:$0xff] }
  0x35   :  { %1185 = vmatprep.subr.bf16.mxu1 %v1184_v41  ;;  %v147_v23 = vld [vmem:[#allocation2 + $0x398] sm:$0xff]  ;;  %v144_v29 = vld [vmem:[#allocation2 + $0x380] sm:$0xff]  ;;  %v146_v32 = vld [vmem:[#allocation2 + $0x390] sm:$0xff] }
  0x36   :  { %289 = vmatmul.mubr.f32.vlgmr.msra.gmra.mrb[0].mxu0 %v1351_v46  ;;  %v1376_v24 = vld [vmem:[%s1500_s0 + $0x18] sm:$0xff]  ;;  %v1200_v31 = vpack.c.bf16 %v147_v23, %v135_v22  ;;  %v157_v33 = vld [vmem:[#allocation2 + $0x3e8] sm:$0xff]  ;;  %v1170_v37 = vpack.c.bf16 %v144_v29, %v132_v28  ;;  %v1202_v38 = vpack.c.bf16 %v146_v32, %v134_v30  ;;  %v156_v40 = vld [vmem:[#allocation2 + $0x3e0] sm:$0xff] }
  0x37   :  { %378 = vmatmul.mubr.f32.vlgmr.msra.gmra.mrb[0].mxu1 %v1351_v46  ;;  %1155 = vmatpush1.bf16.msra.mxu0 %v1154_v47  ;;  %v169_v34 = vld [vmem:[#allocation2 + $0x448] sm:$0xff]  ;;  %v159_v35 = vld [vmem:[#allocation2 + $0x3f8] sm:$0xff]  ;;  %v168_v41 = vld [vmem:[#allocation2 + $0x440] sm:$0xff] }
  0x38   :  { %1187 = vmatpush1.bf16.msra.mxu1 %v1186_v50  ;;  %294 = vmatprep.mubr.f32.mxu0 %v1312_v0  ;;  %v171_v36 = vld [vmem:[#allocation2 + $0x458] sm:$0xff]  ;;  %v1172_v39 = vpack.c.bf16 %v169_v34, %v157_v33  ;;  %v158_v42 = vld [vmem:[#allocation2 + $0x3f0] sm:$0xff]  ;;  %v181_v45 = vld [vmem:[#allocation2 + $0x4a8] sm:$0xff]  ;;  %v1174_v50 = vpack.c.bf16 %v168_v41, %v156_v40 }
  0x39   :  { %383 = vmatprep.mubr.f32.mxu1 %v1312_v0  ;;  %1157 = vmatprep.subr.bf16.mxu0 %v1156_v53  ;;  %v1204_v43 = vpack.c.bf16 %v171_v36, %v159_v35  ;;  %v170_v44 = vld [vmem:[#allocation2 + $0x450] sm:$0xff]  ;;  %v193_v47 = vld [vmem:[#allocation2 + $0x508] sm:$0xff]  ;;  %v183_v48 = vld [vmem:[#allocation2 + $0x4b8] sm:$0xff] }
  0x3a   :  { %295 = vmatmul.mubr.f32.gmra.mrb[2].mxu0 %v1358_v61  ;;  %1189 = vmatprep.subr.bf16.mxu1 %v1188_v57  ;;  %v195_v49 = vld [vmem:[#allocation2 + $0x518] sm:$0xff]  ;;  %v1206_v51 = vpack.c.bf16 %v170_v44, %v158_v42  ;;  %v1176_v52 = vpack.c.bf16 %v193_v47, %v181_v45  ;;  %v180_v53 = vld [vmem:[#allocation2 + $0x4a0] sm:$0xff]  ;;  %v182_v55 = vld [vmem:[#allocation2 + $0x4b0] sm:$0xff] }
  0x3b   :  { %384 = vmatmul.mubr.f32.gmra.mrb[2].mxu1 %v1358_v61  ;;  %1159 = vmatpush1.bf16.msra.mxu0 %v1158_v62  ;;  %v192_v54 = vld [vmem:[#allocation2 + $0x500] sm:$0xff]  ;;  %v1208_v56 = vpack.c.bf16 %v195_v49, %v183_v48  ;;  %v194_v57 = vld [vmem:[#allocation2 + $0x510] sm:$0xff]  ;;  %v205_v58 = vld [vmem:[#allocation2 + $0x568] sm:$0xff] }
  0x3c   :  { %1191 = vmatpush1.bf16.msra.mxu1 %v1190_v63  ;;  %300 = vmatprep.mubr.f32.mxu0 %v1312_v0  ;;  %v217_v59 = vld [vmem:[#allocation2 + $0x5c8] sm:$0xff]  ;;  %v207_v60 = vld [vmem:[#allocation2 + $0x578] sm:$0xff]  ;;  %v1178_v63 = vpack.c.bf16 %v192_v54, %v180_v53  ;;  %v1210_v1 = vpack.c.bf16 %v194_v57, %v182_v55  ;;  %v204_v3 = vld [vmem:[#allocation2 + $0x560] sm:$0xff] }
  0x3d   :  { %1161 = vmatprep.subr.bf16.mxu0 %v1160_v4  ;;  %1193 = vmatprep.subr.bf16.mxu1 %v1192_v5  ;;  %v219_v62 = vld [vmem:[#allocation2 + $0x5d8] sm:$0xff]  ;;  %v1180_v2 = vpack.c.bf16 %v217_v59, %v205_v58  ;;  %v216_v4 = vld [vmem:[#allocation2 + $0x5c0] sm:$0xff]  ;;  %v206_v5 = vld [vmem:[#allocation2 + $0x570] sm:$0xff] }
  0x3e   :  { %301 = vmatmul.mubr.f32.gmra.mrb[4].mxu0 %v1367_v11  ;;  %389 = vmatprep.mubr.f32.mxu1 %v1312_v0  ;;  %v1212_v6 = vpack.c.bf16 %v219_v62, %v207_v60  ;;  %v218_v7 = vld [vmem:[#allocation2 + $0x5d0] sm:$0xff]  ;;  %v41_v8 = vld [vmem:[#allocation2 + $0x48] sm:$0xff]  ;;  %v43_v10 = vld [vmem:[#allocation2 + $0x58] sm:$0xff] }
  0x3f   :  { %1163 = vmatpush1.bf16.msra.mxu0 %v1162_v12  ;;  %306 = vmatprep.mubr.f32.mxu0 %v1312_v0  ;;  %v53_v9 = vld [vmem:[#allocation2 + $0xa8] sm:$0xff]  ;;  %v55_v12 = vld [vmem:[#allocation2 + $0xb8] sm:$0xff]  ;;  %v40_v16 = vld [vmem:[#allocation2 + $0x40] sm:$0xff] }
  0x40   :  { %1195 = vmatpush1.bf16.msra.mxu1 %v1194_v13  ;;  %1165 = vmatprep.subr.bf16.mxu0 %v1164_v14  ;;  %v1182_v13 = vpack.c.bf16 %v216_v4, %v204_v3  ;;  %v1214_v14 = vpack.c.bf16 %v218_v7, %v206_v5  ;;  %v1216_v15 = vpack.c.bf16 %v53_v9, %v41_v8  ;;  %v52_v17 = vld [vmem:[#allocation2 + $0xa0] sm:$0xff]  ;;  %v42_v19 = vld [vmem:[#allocation2 + $0x50] sm:$0xff]  ;;  %v65_v21 = vld [vmem:[#allocation2 + $0x108] sm:$0xff] }
  0x41   :  { %390 = vmatmul.mubr.f32.gmra.mrb[4].mxu1 %v1367_v11  ;;  %1197 = vmatprep.subr.bf16.mxu1 %v1196_v18  ;;  %v1248_v18 = vpack.c.bf16 %v55_v12, %v43_v10  ;;  %v54_v20 = vld [vmem:[#allocation2 + $0xb0] sm:$0xff]  ;;  %v77_v22 = vld [vmem:[#allocation2 + $0x168] sm:$0xff]  ;;  %v1218_v23 = vpack.c.bf16 %v52_v17, %v40_v16  ;;  %v64_v28 = vld [vmem:[#allocation2 + $0x100] sm:$0xff] }
  0x42   :  { %307 = vmatmul.mubr.f32.gmra.mrb[6].mxu0 %v1376_v24  ;;  %395 = vmatprep.mubr.f32.mxu1 %v1312_v0  ;;  %v76_v29 = vld [vmem:[#allocation2 + $0x160] sm:$0xff]  ;;  %v1220_v30 = vpack.c.bf16 %v77_v22, %v65_v21  ;;  %v78_v32 = vld [vmem:[#allocation2 + $0x170] sm:$0xff]  ;;  %v89_v33 = vld [vmem:[#allocation2 + $0x1c8] sm:$0xff] }
  0x43   :  { %1167 = vmatpush1.bf16.msra.mxu0 %v1166_v25  ;;  %466 = vmatprep.mubr.f32.mxu0 %v1312_v0  ;;  %v67_v25 = vld [vmem:[#allocation2 + $0x118] sm:$0xff]  ;;  %v101_v35 = vld [vmem:[#allocation2 + $0x228] sm:$0xff]  ;;  %v88_v40 = vld [vmem:[#allocation2 + $0x1c0] sm:$0xff] }
  0x44   :  { %1199 = vmatpush1.bf16.msra.mxu1 %v1198_v26  ;;  %1169 = vmatprep.subr.bf16.mxu0 %v1168_v27  ;;  %v79_v26 = vld [vmem:[#allocation2 + $0x178] sm:$0xff]  ;;  %v1250_v27 = vpack.c.bf16 %v54_v20, %v42_v19  ;;  %v100_v41 = vld [vmem:[#allocation2 + $0x220] sm:$0xff]  ;;  %v90_v42 = vld [vmem:[#allocation2 + $0x1d0] sm:$0xff] }
  0x45   :  { %396 = vmatmul.mubr.f32.gmra.mrb[6].mxu1 %v1376_v24  ;;  %1201 = vmatprep.subr.bf16.mxu1 %v1200_v31  ;;  %v66_v31 = vld [vmem:[#allocation2 + $0x110] sm:$0xff]  ;;  %v1252_v34 = vpack.c.bf16 %v79_v26, %v67_v25  ;;  %v91_v36 = vld [vmem:[#allocation2 + $0x1d8] sm:$0xff]  ;;  %v113_v47 = vld [vmem:[#allocation2 + $0x288] sm:$0xff] }
  0x46   :  { %555 = vmatprep.mubr.f32.mxu1 %v1312_v0  ;;  %v102_v45 = vld [vmem:[#allocation2 + $0x230] sm:$0xff]  ;;  %v125_v48 = vld [vmem:[#allocation2 + $0x2e8] sm:$0xff]  ;;  %v115_v49 = vld [vmem:[#allocation2 + $0x298] sm:$0xff] }
  0x47   :  { %1171 = vmatpush1.bf16.msra.mxu0 %v1170_v37  ;;  %v103_v37 = vld [vmem:[#allocation2 + $0x238] sm:$0xff]  ;;  %v1228_v53 = vpack.c.bf16 %v125_v48, %v113_v47  ;;  %v112_v54 = vld [vmem:[#allocation2 + $0x280] sm:$0xff]  ;;  %v126_v58 = vld [vmem:[#allocation2 + $0x2f0] sm:$0xff] }
  0x48   :  { %1203 = vmatpush1.bf16.msra.mxu1 %v1202_v38  ;;  %1173 = vmatprep.subr.bf16.mxu0 %v1172_v39  ;;  %v1222_v38 = vpack.c.bf16 %v76_v29, %v64_v28  ;;  %v1254_v39 = vpack.c.bf16 %v78_v32, %v66_v31  ;;  %v1256_v44 = vpack.c.bf16 %v103_v37, %v91_v36  ;;  %v124_v55 = vld [vmem:[#allocation2 + $0x2e0] sm:$0xff]  ;;  %v137_v59 = vld [vmem:[#allocation2 + $0x348] sm:$0xff]  ;;  %v139_v62 = vld [vmem:[#allocation2 + $0x358] sm:$0xff] }
  0x49   :  { %1205 = vmatprep.subr.bf16.mxu1 %v1204_v43  ;;  %v1224_v43 = vpack.c.bf16 %v101_v35, %v89_v33  ;;  %v149_v60 = vld [vmem:[#allocation2 + $0x3a8] sm:$0xff]  ;;  %v136_v4 = vld [vmem:[#allocation2 + $0x340] sm:$0xff]  ;;  %v150_v8 = vld [vmem:[#allocation2 + $0x3b0] sm:$0xff] }
  0x4a   :  { %v1232_v3 = vpack.c.bf16 %v149_v60, %v137_v59  ;;  %v148_v5 = vld [vmem:[#allocation2 + $0x3a0] sm:$0xff]  ;;  %v161_v9 = vld [vmem:[#allocation2 + $0x408] sm:$0xff]  ;;  %v163_v12 = vld [vmem:[#allocation2 + $0x418] sm:$0xff] }
  0x4b   :  { %1175 = vmatpush1.bf16.msra.mxu0 %v1174_v50  ;;  %v127_v50 = vld [vmem:[#allocation2 + $0x2f8] sm:$0xff]  ;;  %v173_v10 = vld [vmem:[#allocation2 + $0x468] sm:$0xff]  ;;  %v160_v17 = vld [vmem:[#allocation2 + $0x400] sm:$0xff] }
  0x4c   :  { %1207 = vmatpush1.bf16.msra.mxu1 %v1206_v51  ;;  %1177 = vmatprep.subr.bf16.mxu0 %v1176_v52  ;;  %v1226_v51 = vpack.c.bf16 %v100_v41, %v88_v40  ;;  %v1258_v52 = vpack.c.bf16 %v102_v45, %v90_v42  ;;  %v1260_v57 = vpack.c.bf16 %v127_v50, %v115_v49  ;;  %v162_v19 = vld [vmem:[#allocation2 + $0x410] sm:$0xff]  ;;  %v185_v22 = vld [vmem:[#allocation2 + $0x4c8] sm:$0xff]  ;;  %v187_v25 = vld [vmem:[#allocation2 + $0x4d8] sm:$0xff] }
  0x4d   :  { %1209 = vmatprep.subr.bf16.mxu1 %v1208_v56  ;;  %v114_v56 = vld [vmem:[#allocation2 + $0x290] sm:$0xff]  ;;  %v1236_v16 = vpack.c.bf16 %v173_v10, %v161_v9  ;;  %v199_v26 = vld [vmem:[#allocation2 + $0x538] sm:$0xff]  ;;  %v196_v31 = vld [vmem:[#allocation2 + $0x520] sm:$0xff] }
  0x4e   :  { %v174_v21 = vld [vmem:[#allocation2 + $0x470] sm:$0xff]  ;;  %v1272_v33 = vpack.c.bf16 %v199_v26, %v187_v25  ;;  %v209_v35 = vld [vmem:[#allocation2 + $0x588] sm:$0xff]  ;;  %v211_v37 = vld [vmem:[#allocation2 + $0x598] sm:$0xff] }
  0x4f   :  { %1179 = vmatpush1.bf16.msra.mxu0 %v1178_v63  ;;  %v151_v63 = vld [vmem:[#allocation2 + $0x3b8] sm:$0xff]  ;;  %v1270_v28 = vpack.c.bf16 %v174_v21, %v162_v19  ;;  %v186_v32 = vld [vmem:[#allocation2 + $0x4d0] sm:$0xff]  ;;  %v221_v36 = vld [vmem:[#allocation2 + $0x5e8] sm:$0xff] }
  0x50   :  { %1211 = vmatpush1.bf16.msra.mxu1 %v1210_v1  ;;  %1181 = vmatprep.subr.bf16.mxu0 %v1180_v2  ;;  %v1230_v1 = vpack.c.bf16 %v124_v55, %v112_v54  ;;  %v1262_v2 = vpack.c.bf16 %v126_v58, %v114_v56  ;;  %v1264_v7 = vpack.c.bf16 %v151_v63, %v139_v62  ;;  %v208_v42 = vld [vmem:[#allocation2 + $0x580] sm:$0xff]  ;;  %v210_v45 = vld [vmem:[#allocation2 + $0x590] sm:$0xff] }
  0x51   :  { %1213 = vmatprep.subr.bf16.mxu1 %v1212_v6  ;;  %v138_v6 = vld [vmem:[#allocation2 + $0x350] sm:$0xff]  ;;  %v1244_v41 = vpack.c.bf16 %v221_v36, %v209_v35  ;;  %v826_v35 = vlaneseq }
  0x52   :  { %v222_v47 = vld [vmem:[#allocation2 + $0x5f0] sm:$0xff] }
  0x53   :  { %1183 = vmatpush1.bf16.msra.mxu0 %v1182_v13  ;;  %v175_v13 = vld [vmem:[#allocation2 + $0x478] sm:$0xff]  ;;  %v1278_v49 = vpack.c.bf16 %v222_v47, %v210_v45 }
  0x54   :  { %1215 = vmatpush1.bf16.msra.mxu1 %v1214_v14  ;;  %1217 = vmatprep.subr.bf16.mxu0 %v1216_v15  ;;  %v1234_v14 = vpack.c.bf16 %v148_v5, %v136_v4  ;;  %v1266_v15 = vpack.c.bf16 %v150_v8, %v138_v6  ;;  %v1268_v20 = vpack.c.bf16 %v175_v13, %v163_v12 }
  0x55   :  { %1249 = vmatprep.subr.bf16.mxu1 %v1248_v18  ;;  %v172_v18 = vld [vmem:[#allocation2 + $0x460] sm:$0xff] }
  0x56   :  { %467 = vmatmul.mubr.f32.vlgmr.msra.gmra.mrb[8].mxu0 %v1351_v46 }
  0x57   :  { %556 = vmatmul.mubr.f32.vlgmr.msra.gmra.mrb[8].mxu1 %v1351_v46  ;;  %1219 = vmatpush1.bf16.msra.mxu0 %v1218_v23  ;;  %v197_v23 = vld [vmem:[#allocation2 + $0x528] sm:$0xff] }
  0x58   :  { %1251 = vmatpush1.bf16.msra.mxu1 %v1250_v27  ;;  %472 = vmatprep.mubr.f32.mxu0 %v1312_v0  ;;  %v1238_v27 = vpack.c.bf16 %v172_v18, %v160_v17  ;;  %v1240_v29 = vpack.c.bf16 %v197_v23, %v185_v22 }
  0x59   :  { %561 = vmatprep.mubr.f32.mxu1 %v1312_v0  ;;  %1221 = vmatprep.subr.bf16.mxu0 %v1220_v30  ;;  %v184_v30 = vld [vmem:[#allocation2 + $0x4c0] sm:$0xff] }
  0x5a   :  { %473 = vmatmul.mubr.f32.gmra.mrb[10].mxu0 %v1358_v61  ;;  %1253 = vmatprep.subr.bf16.mxu1 %v1252_v34  ;;  %v198_v34 = vld [vmem:[#allocation2 + $0x530] sm:$0xff] }
  0x5b   :  { %562 = vmatmul.mubr.f32.gmra.mrb[10].mxu1 %v1358_v61  ;;  %1223 = vmatpush1.bf16.msra.mxu0 %v1222_v38  ;;  %v223_v38 = vld [vmem:[#allocation2 + $0x5f8] sm:$0xff]  ;;  %v1274_v40 = vpack.c.bf16 %v198_v34, %v186_v32 }
  0x5c   :  { %1255 = vmatpush1.bf16.msra.mxu1 %v1254_v39  ;;  %478 = vmatprep.mubr.f32.mxu0 %v1312_v0  ;;  %v1242_v39 = vpack.c.bf16 %v196_v31, %v184_v30 }
  0x5d   :  { %1225 = vmatprep.subr.bf16.mxu0 %v1224_v43  ;;  %1257 = vmatprep.subr.bf16.mxu1 %v1256_v44  ;;  %v220_v43 = vld [vmem:[#allocation2 + $0x5e0] sm:$0xff]  ;;  %v1276_v44 = vpack.c.bf16 %v223_v38, %v211_v37 }
  0x5e   :  { %479 = vmatmul.mubr.f32.gmra.mrb[12].mxu0 %v1367_v11  ;;  %567 = vmatprep.mubr.f32.mxu1 %v1312_v0  ;;  %v1246_v48 = vpack.c.bf16 %v220_v43, %v208_v42  ;;  %v1085_v38 = vld [vmem:[%s1502_s2] ss:$0 sm:$0xff] }
  0x5f   :  { %1227 = vmatpush1.bf16.msra.mxu0 %v1226_v51  ;;  %484 = vmatprep.mubr.f32.mxu0 %v1312_v0 }
  0x60   :  { %1259 = vmatpush1.bf16.msra.mxu1 %v1258_v52  ;;  %1229 = vmatprep.subr.bf16.mxu0 %v1228_v53 }
  0x61   :  { %568 = vmatmul.mubr.f32.gmra.mrb[12].mxu1 %v1367_v11  ;;  %1261 = vmatprep.subr.bf16.mxu1 %v1260_v57 }
  0x62   :  { %485 = vmatmul.mubr.f32.gmra.mrb[14].mxu0 %v1376_v24  ;;  %573 = vmatprep.mubr.f32.mxu1 %v1312_v0 }
  0x63   :  { %1231 = vmatpush1.bf16.msra.mxu0 %v1230_v1  ;;  %644 = vmatprep.mubr.f32.mxu0 %v1312_v0 }
  0x64   :  { %1263 = vmatpush1.bf16.msra.mxu1 %v1262_v2  ;;  %1233 = vmatprep.subr.bf16.mxu0 %v1232_v3 }
  0x65   :  { %574 = vmatmul.mubr.f32.gmra.mrb[14].mxu1 %v1376_v24  ;;  %1265 = vmatprep.subr.bf16.mxu1 %v1264_v7 }
  0x66   :  { %733 = vmatprep.mubr.f32.mxu1 %v1312_v0 }
  0x67   :  { %1235 = vmatpush1.bf16.msra.mxu0 %v1234_v14 }
  0x68   :  { %1267 = vmatpush1.bf16.msra.mxu1 %v1266_v15  ;;  %1237 = vmatprep.subr.bf16.mxu0 %v1236_v16 }
  0x69   :  { %1269 = vmatprep.subr.bf16.mxu1 %v1268_v20 }
  0x6b   :  { %1239 = vmatpush1.bf16.msra.mxu0 %v1238_v27 }
  0x6c   :  { %1271 = vmatpush1.bf16.msra.mxu1 %v1270_v28  ;;  %1241 = vmatprep.subr.bf16.mxu0 %v1240_v29 }
  0x6d   :  { %1273 = vmatprep.subr.bf16.mxu1 %v1272_v33  ;;  %v1313_v33 = vmov 1983009808  }
  0x6e   :  { %v824_v34 = vunpack.c.l.s4 %v1313_v33 }
  0x6f   :  { %1243 = vmatpush1.bf16.msra.mxu0 %v1242_v39 }
  0x70   :  { %1275 = vmatpush1.bf16.msra.mxu1 %v1274_v40  ;;  %1245 = vmatprep.subr.bf16.mxu0 %v1244_v41  ;;  %v825_v40 = vunpack.c.0.s8 %v824_v34  ;;  %v827_v41 = vshrl.u32 %v826_v35, 7 }
  0x71   :  { %1277 = vmatprep.subr.bf16.mxu1 %v1276_v44 }
  0x73   :  { %1247 = vmatpush1.bf16.msra.mxu0 %v1246_v48 }
  0x74   :  { %1279 = vmatpush1.bf16.msra.mxu1 %v1278_v49 }
  0x76   :  { %645 = vmatmul.mubr.f32.vlgmr.msra.gmra.mrb[16].mxu0 %v1351_v46 }
  0x77   :  { %734 = vmatmul.mubr.f32.vlgmr.msra.gmra.mrb[16].mxu1 %v1351_v46  ;;  %650 = vmatprep.mubr.f32.mxu0 %v1312_v0 }
  0x78   :  { %739 = vmatprep.mubr.f32.mxu1 %v1312_v0 }
  0x7a   :  { %651 = vmatmul.mubr.f32.gmra.mrb[18].mxu0 %v1358_v61 }
  0x7b   :  { %740 = vmatmul.mubr.f32.gmra.mrb[18].mxu1 %v1358_v61  ;;  %656 = vmatprep.mubr.f32.mxu0 %v1312_v0 }
  0x7c   :  { %745 = vmatprep.mubr.f32.mxu1 %v1312_v0 }
  0x7e   :  { %657 = vmatmul.mubr.f32.gmra.mrb[20].mxu0 %v1367_v11 }
  0x7f   :  { %746 = vmatmul.mubr.f32.gmra.mrb[20].mxu1 %v1367_v11  ;;  %662 = vmatprep.mubr.f32.mxu0 %v1312_v0 }
  0x80   :  { %751 = vmatprep.mubr.f32.mxu1 %v1312_v0 }
  0x82   :  { %663 = vmatmul.mubr.f32.gmra.mrb[22].mxu0 %v1376_v24 }
  0x83   :  { %752 = vmatmul.mubr.f32.gmra.mrb[22].mxu1 %v1376_v24 }
 0x109   :  { %v290_v46 = vpop.f32.mrb[0].mxu0 }
 0x10a   :  { %v292_v50 = vpop.f32.mrb[1].mxu0  ;;  %v379_v51 = vpop.f32.mrb[0].mxu1 }
 0x10b   :  { %v1414_v61 = vpop.f32.mrb[1].mxu1  ;;  %v782_v52 = vrot.slane %v379_v51, 2  ;;  %v763_v11 = vrot.slane %v292_v50, 1 }
 0x10d   :  { %v296_v53 = vpop.f32.mrb[2].mxu0 }
 0x10e   :  { %v298_v54 = vpop.f32.mrb[3].mxu0  ;;  %v385_v55 = vpop.f32.mrb[2].mxu1 }
 0x10f   :  { %v764_v56 = vrot.slane %v298_v54, 1  ;;  %v783_v57 = vrot.slane %v385_v55, 2  ;;  %v1416_v58 = vpop.f32.mrb[3].mxu1 }
 0x111   :  { %v765_v0 = vsel %vm762_vm0, %v763_v11, %v764_v56  ;;  %v774_v59 = vadd.f32 %v764_v56, %v296_v53  ;;  %v784_v24 = vsel %vm781_vm1, %v782_v52, %v783_v57  ;;  %v302_v60 = vpop.f32.mrb[4].mxu0 }
 0x112   :  { %v773_v62 = vadd.f32 %v765_v0, %v290_v46  ;;  %v304_v63 = vpop.f32.mrb[5].mxu0  ;;  %v1433_v46 = vsub.s32 %v825_v40, %v827_v41 }
 0x113   :  { %v793_v1 = vadd.f32 %v783_v57, %v774_v59  ;;  %v766_v5 = vrot.slane %v304_v63, 1 }
 0x114   :  { %v792_v2 = vadd.f32 %v784_v24, %v773_v62  ;;  %v391_v3 = vpop.f32.mrb[4].mxu1 }
 0x115   :  { %v796_v4 = vsel %vm781_vm1, %v793_v1, -inf  ;;  %v308_v6 = vpop.f32.mrb[6].mxu0  ;;  %v1421_v7 = vpop.f32.mrb[5].mxu1  ;;  %v785_v12 = vrot.slane %v391_v3, 2 }
 0x116   :  { %v797_v8 = vmax.f32 %v792_v2, %v796_v4  ;;  %v310_v9 = vpop.f32.mrb[7].mxu0 }
 0x117   :  { %v767_v10 = vrot.slane %v310_v9, 1 }
 0x118   :  { %v798_v13 = vrot.slane %v797_v8, 4  ;;  %v397_v14 = vpop.f32.mrb[6].mxu1 }
 0x119   :  { %v768_v15 = vsel %vm762_vm0, %v766_v5, %v767_v10  ;;  %v776_v16 = vadd.f32 %v767_v10, %v308_v6  ;;  %v786_v17 = vrot.slane %v397_v14, 2  ;;  %v1424_v18 = vpop.f32.mrb[7].mxu1 }
 0x11a   :  { %v799_v19 = vmax.f32 %v797_v8, %v798_v13  ;;  %v775_v20 = vadd.f32 %v768_v15, %v302_v60 }
 0x11b   :  { %v787_v21 = vsel %vm781_vm1, %v785_v12, %v786_v17  ;;  %v795_v22 = vadd.f32 %v786_v17, %v776_v16 }
 0x11c   :  { %v800_v23 = vrot.slane %v799_v19, 2  ;;  %v794_v25 = vadd.f32 %v787_v21, %v775_v20 }
 0x11d   :  { %v804_v26 = vsel %vm781_vm1, %v795_v22, -inf }
 0x11e   :  { %v801_v27 = vmax.f32 %v799_v19, %v800_v23  ;;  %v805_v28 = vmax.f32 %v794_v25, %v804_v26 }
 0x120   :  { %v806_v29 = vrot.slane %v805_v28, 4  ;;  %v802_v30 = vrot.slane %v801_v27, 1 }
 0x122   :  { %v807_v31 = vmax.f32 %v805_v28, %v806_v29  ;;  %v803_v36 = vmax.f32 %v801_v27, %v802_v30 }
 0x124   :  { %v808_v32 = vrot.slane %v807_v31, 2  ;;  %v817_v43 = vadd.f32 %v1085_v38, %v803_v36 }
 0x126   :  { %v809_v37 = vmax.f32 %v807_v31, %v808_v32  ;;  %v819_v52 = vmax.f32 %v817_v43, 0.0 }
 0x128   :  { %v810_v39 = vrot.slane %v809_v37, 1  ;;  %v829_v5 = vrot.slane %v819_v52, %v1433_v46  ;;  %v1086_v52 = vld [vmem:[%s1502_s2 + $0x1] ss:$0 sm:$0xff] }
 0x129   :  { %v468_v42 = vpop.f32.mrb[8].mxu0 }
 0x12a   :  { %v811_v44 = vmax.f32 %v809_v37, %v810_v39  ;;  %v470_v45 = vpop.f32.mrb[9].mxu0  ;;  %v557_v47 = vpop.f32.mrb[8].mxu1  ;;  %v856_v54 = vrot.slane %v468_v42, 1 }
 0x12b   :  { %v1431_v48 = vpop.f32.mrb[9].mxu1  ;;  %v893_v50 = vrot.slane %v557_v47, 3  ;;  %v874_v57 = vrot.slane %v470_v45, 2 }
 0x12c   :  { %v818_v49 = vadd.f32 %v1085_v38, %v811_v44 }
 0x12d   :  { %v474_v51 = vpop.f32.mrb[10].mxu0 }
 0x12e   :  { %v820_v53 = vmax.f32 %v818_v49, 0.0  ;;  %v857_v55 = vrot.slane %v474_v51, 1  ;;  %v476_v11 = vpop.f32.mrb[11].mxu0  ;;  %v563_v56 = vpop.f32.mrb[10].mxu1 }
 0x12f   :  { %v875_v0 = vrot.slane %v476_v11, 2  ;;  %v894_v59 = vrot.slane %v563_v56, 3  ;;  %v1435_v24 = vpop.f32.mrb[11].mxu1 }
 0x130   :  { %v836_v60 = vrot.slane %v820_v53, %v1433_v46  ;;  %v858_v62 = vsel %vm762_vm0, %v856_v54, %v857_v55  ;;  %v867_v63 = vadd.f32 %v857_v55, %v1416_v58 }
 0x131   :  { %v866_v1 = vadd.f32 %v858_v62, %v1414_v61  ;;  %v876_v2 = vsel %vm781_vm1, %v874_v57, %v875_v0  ;;  %v895_v3 = vsel %vm892_vm2, %v893_v50, %v894_v59  ;;  %v480_v4 = vpop.f32.mrb[12].mxu0 }
 0x132   :  { %v841_v6 = vrot.slane %v836_v60, 7  ;;  %v885_v8 = vadd.f32 %v875_v0, %v867_v63  ;;  %v482_v9 = vpop.f32.mrb[13].mxu0  ;;  %v859_v13 = vrot.slane %v480_v4, 1 }
 0x133   :  { %v884_v10 = vadd.f32 %v876_v2, %v866_v1  ;;  %v877_v16 = vrot.slane %v482_v9, 2 }
 0x134   :  { %v843_v12 = vsel %vm842_vm3, %v841_v6, %v829_v5  ;;  %v904_v58 = vadd.f32 %v894_v59, %v885_v8  ;;  %v569_v14 = vpop.f32.mrb[12].mxu1 }
 0x135   :  { %v845_v61 = vsel %vm844_vm4, %v841_v6, %v843_v12  ;;  %v903_v15 = vadd.f32 %v895_v3, %v884_v10  ;;  %v486_v17 = vpop.f32.mrb[14].mxu0  ;;  %v1446_v19 = vpop.f32.mrb[13].mxu1  ;;  %v896_v28 = vrot.slane %v569_v14, 3 }
 0x136   :  { %v847_v20 = vsel %vm846_vm5, %v841_v6, %v845_v61  ;;  %v907_v21 = vsel %vm892_vm2, %v904_v58, -inf  ;;  %v860_v22 = vrot.slane %v486_v17, 1  ;;  %v488_v23 = vpop.f32.mrb[15].mxu0 }
 0x137   :  { %v849_v25 = vsel %vm848_vm6, %v841_v6, %v847_v20  ;;  %v908_v26 = vmax.f32 %v903_v15, %v907_v21  ;;  %v878_v27 = vrot.slane %v488_v23, 2 }
 0x138   :  { %851 = vst [vmem:[%s1503_s3] sm:$0x3] %v849_v25  ;;  %v861_v29 = vsel %vm762_vm0, %v859_v13, %v860_v22  ;;  %v869_v30 = vadd.f32 %v860_v22, %v1424_v18  ;;  %v575_v31 = vpop.f32.mrb[14].mxu1 }
 0x139   :  { %v909_v32 = vrot.slane %v908_v26, 4  ;;  %v868_v33 = vadd.f32 %v861_v29, %v1421_v7  ;;  %v879_v34 = vsel %vm781_vm1, %v877_v16, %v878_v27  ;;  %v897_v35 = vrot.slane %v575_v31, 3  ;;  %v1458_v36 = vpop.f32.mrb[15].mxu1 }
 0x13a   :  { %v887_v37 = vadd.f32 %v878_v27, %v869_v30 }
 0x13b   :  { %v910_v38 = vmax.f32 %v908_v26, %v909_v32  ;;  %v886_v39 = vadd.f32 %v879_v34, %v868_v33  ;;  %v898_v40 = vsel %vm892_vm2, %v896_v28, %v897_v35 }
 0x13c   :  { %v906_v41 = vadd.f32 %v897_v35, %v887_v37 }
 0x13d   :  { %v911_v42 = vrot.slane %v910_v38, 2  ;;  %v905_v43 = vadd.f32 %v898_v40, %v886_v39 }
 0x13e   :  { %v915_v44 = vsel %vm892_vm2, %v906_v41, -inf }
 0x13f   :  { %v912_v18 = vmax.f32 %v910_v38, %v911_v42  ;;  %v916_v45 = vmax.f32 %v905_v43, %v915_v44 }
 0x141   :  { %v917_v47 = vrot.slane %v916_v45, 4  ;;  %v913_v49 = vrot.slane %v912_v18, 1 }
 0x143   :  { %v918_v7 = vmax.f32 %v916_v45, %v917_v47  ;;  %v914_v51 = vmax.f32 %v912_v18, %v913_v49 }
 0x145   :  { %v919_v50 = vrot.slane %v918_v7, 2  ;;  %v928_v11 = vadd.f32 %v1086_v52, %v914_v51 }
 0x147   :  { %v920_v53 = vmax.f32 %v918_v7, %v919_v50  ;;  %v930_v1 = vmax.f32 %v928_v11, 0.0 }
 0x149   :  { %v921_v54 = vrot.slane %v920_v53, 1  ;;  %v646_v55 = vpop.f32.mrb[16].mxu0  ;;  %v940_v27 = vrot.slane %v930_v1, %v1433_v46 }
 0x14a   :  { %v648_v56 = vpop.f32.mrb[17].mxu0  ;;  %v735_v57 = vpop.f32.mrb[16].mxu1  ;;  %v961_v2 = vrot.slane %v646_v55, 1 }
 0x14b   :  { %v922_v0 = vmax.f32 %v920_v53, %v921_v54  ;;  %v737_v59 = vpop.f32.mrb[17].mxu1  ;;  %v997_v62 = vrot.slane %v735_v57, 3  ;;  %v979_v9 = vrot.slane %v648_v56, 2 }
 0x14c   :  { %v1016_v3 = vrot.slane %v737_v59, 4 }
 0x14d   :  { %v929_v60 = vadd.f32 %v1086_v52, %v922_v0  ;;  %v652_v63 = vpop.f32.mrb[18].mxu0 }
 0x14e   :  { %v962_v4 = vrot.slane %v652_v63, 1  ;;  %v741_v5 = vpop.f32.mrb[18].mxu1  ;;  %v654_v6 = vpop.f32.mrb[19].mxu0 }
 0x14f   :  { %v931_v8 = vmax.f32 %v929_v60, 0.0  ;;  %v998_v10 = vrot.slane %v741_v5, 3  ;;  %v980_v12 = vrot.slane %v654_v6, 2  ;;  %v743_v58 = vpop.f32.mrb[19].mxu1 }
 0x150   :  { %v963_v13 = vsel %vm762_vm0, %v961_v2, %v962_v4  ;;  %v972_v14 = vadd.f32 %v962_v4, %v1435_v24  ;;  %v1017_v61 = vrot.slane %v743_v58, 4  ;;  %v1087_v58 = vld [vmem:[%s1502_s2 + $0x2] ss:$0 sm:$0xff] }
 0x151   :  { %v947_v15 = vrot.slane %v931_v8, %v1433_v46  ;;  %v971_v16 = vadd.f32 %v963_v13, %v1431_v48  ;;  %v999_v17 = vsel %vm892_vm2, %v997_v62, %v998_v10  ;;  %v981_v20 = vsel %vm781_vm1, %v979_v9, %v980_v12  ;;  %v658_v21 = vpop.f32.mrb[20].mxu0 }
 0x152   :  { %v990_v22 = vadd.f32 %v980_v12, %v972_v14  ;;  %v1018_v23 = vsel %vm1015_vm7, %v1016_v3, %v1017_v61  ;;  %v660_v25 = vpop.f32.mrb[21].mxu0  ;;  %v747_v26 = vpop.f32.mrb[20].mxu1  ;;  %v964_v31 = vrot.slane %v658_v21, 1 }
 0x153   :  { %v950_v28 = vrot.slane %v947_v15, 7  ;;  %v989_v29 = vadd.f32 %v981_v20, %v971_v16  ;;  %v749_v24 = vpop.f32.mrb[21].mxu1  ;;  %v982_v33 = vrot.slane %v660_v25, 2  ;;  %v1000_v34 = vrot.slane %v747_v26, 3 }
 0x154   :  { %v1008_v30 = vadd.f32 %v998_v10, %v990_v22  ;;  %v1019_v39 = vrot.slane %v749_v24, 4 }
 0x155   :  { %v951_v32 = vsel %vm842_vm3, %v950_v28, %v940_v27  ;;  %v1007_v48 = vadd.f32 %v999_v17, %v989_v29  ;;  %v664_v35 = vpop.f32.mrb[22].mxu0 }
 0x156   :  { %v952_v37 = vsel %vm844_vm4, %v950_v28, %v951_v32  ;;  %v1027_v38 = vadd.f32 %v1017_v61, %v1008_v30  ;;  %v965_v40 = vrot.slane %v664_v35, 1  ;;  %v753_v41 = vpop.f32.mrb[22].mxu1  ;;  %v666_v42 = vpop.f32.mrb[23].mxu0 }
 0x157   :  { %v953_v43 = vsel %vm846_vm5, %v950_v28, %v952_v37  ;;  %v1026_v44 = vadd.f32 %v1018_v23, %v1007_v48  ;;  %v1001_v18 = vrot.slane %v753_v41, 3  ;;  %v983_v45 = vrot.slane %v666_v42, 2  ;;  %v755_v47 = vpop.f32.mrb[23].mxu1 }
 0x158   :  { %v954_v49 = vsel %vm848_vm6, %v950_v28, %v953_v43  ;;  %v1030_v7 = vsel %vm1015_vm7, %v1027_v38, -inf  ;;  %v966_v50 = vsel %vm762_vm0, %v964_v31, %v965_v40  ;;  %v974_v51 = vadd.f32 %v965_v40, %v1458_v36 }
 0x159   :  { %956 = vst [vmem:[%s1503_s3 + $0x2] sm:$0x3] %v954_v49  ;;  %v1031_v52 = vmax.f32 %v1026_v44, %v1030_v7  ;;  %v973_v53 = vadd.f32 %v966_v50, %v1446_v19  ;;  %v1002_v54 = vsel %vm892_vm2, %v1000_v34, %v1001_v18  ;;  %v984_v55 = vsel %vm781_vm1, %v982_v33, %v983_v45 }
 0x15a   :  { %v992_v11 = vadd.f32 %v983_v45, %v974_v51  ;;  %v1020_v56 = vrot.slane %v755_v47, 4 }
 0x15b   :  { %v1032_v57 = vrot.slane %v1031_v52, 4  ;;  %v991_v0 = vadd.f32 %v984_v55, %v973_v53 }
 0x15c   :  { %v1010_v59 = vadd.f32 %v1001_v18, %v992_v11  ;;  %v1021_v60 = vsel %vm1015_vm7, %v1019_v39, %v1020_v56 }
 0x15d   :  { %v1033_v62 = vmax.f32 %v1031_v52, %v1032_v57  ;;  %v1009_v36 = vadd.f32 %v1002_v54, %v991_v0 }
 0x15e   :  { %v1029_v63 = vadd.f32 %v1020_v56, %v1010_v59 }
 0x15f   :  { %v1034_v1 = vrot.slane %v1033_v62, 2  ;;  %v1028_v2 = vadd.f32 %v1021_v60, %v1009_v36 }
 0x160   :  { %v1038_v3 = vsel %vm1015_vm7, %v1029_v63, -inf }
 0x161   :  { %v1035_v4 = vmax.f32 %v1033_v62, %v1034_v1  ;;  %v1039_v19 = vmax.f32 %v1028_v2, %v1038_v3 }
 0x163   :  { %v1040_v5 = vrot.slane %v1039_v19, 4  ;;  %v1036_v6 = vrot.slane %v1035_v4, 1 }
 0x165   :  { %v1041_v8 = vmax.f32 %v1039_v19, %v1040_v5  ;;  %v1037_v10 = vmax.f32 %v1035_v4, %v1036_v6 }
 0x167   :  { %v1042_v9 = vrot.slane %v1041_v8, 2  ;;  %v1051_v14 = vadd.f32 %v1087_v58, %v1037_v10 }
 0x169   :  { %v1043_v12 = vmax.f32 %v1041_v8, %v1042_v9  ;;  %v1053_v16 = vmax.f32 %v1051_v14, 0.0 }
 0x16b   :  { %v1044_v13 = vrot.slane %v1043_v12, 1  ;;  %v1063_v21 = vrot.slane %v1053_v16, %v1433_v46 }
 0x16d   :  { %v1045_v61 = vmax.f32 %v1043_v12, %v1044_v13 }
 0x16f   :  { %v1052_v15 = vadd.f32 %v1087_v58, %v1045_v61 }
 0x171   :  { %v1054_v17 = vmax.f32 %v1052_v15, 0.0 }
 0x173   :  { %v1070_v20 = vrot.slane %v1054_v17, %v1433_v46 }
 0x175   :  { %v1073_v22 = vrot.slane %v1070_v20, 7 }
 0x177   :  { %v1074_v23 = vsel %vm842_vm3, %v1073_v22, %v1063_v21 }
 0x178   :  { %v1075_v25 = vsel %vm844_vm4, %v1073_v22, %v1074_v23 }
 0x179   :  { %v1076_v26 = vsel %vm846_vm5, %v1073_v22, %v1075_v25 }
 0x17a   :  { %v1077_v27 = vsel %vm848_vm6, %v1073_v22, %v1076_v26 }
 0x17b   :  { %1079 = vst [vmem:[%s1503_s3 + $0x4] sm:$0x3] %v1077_v27 }
 0x17c   :  { %1084 = vsyncpa [#allocation3], 1 }

</bundles_post_ra>
